<compile_context>
chip_gen: v6e
topology: v6e:2x2x1
jax: 0.10.0
libtpu: 0.0.40
codegen_flags: <defaults>
</compile_context>

<pallas_src>
import jax
import jax.numpy as jnp
from jax import lax
from jax.experimental import pallas as pl
from jax.experimental.pallas import tpu as pltpu


def _focal_ce_kernel(row_tile, n_total, needs_mask):
    """Sums per-row cross-entropy over this core's row blocks."""

    def kernel(x_ref, t_ref, out_ref, acc_ref):
        c = pl.program_id(0)            # core (parallel) axis
        i = pl.program_id(1)            # row-block (reduction) axis
        n_steps = pl.num_programs(1)

        @pl.when(i == 0)
        def _():
            acc_ref[...] = jnp.zeros_like(acc_ref)

        x = x_ref[...].astype(jnp.float32)           # (row_tile, C) upcast in-kernel
        t = t_ref[...]                               # (row_tile, 1) int32

        # Row-wise log-sum-exp on shifted logits (numerically stable).
        m = jnp.max(x, axis=-1, keepdims=True)                       # (row_tile, 1)
        shifted = x - m                                               # (row_tile, C)
        sum_e = jnp.sum(jnp.exp(shifted), axis=-1, keepdims=True)     # (row_tile, 1)

        # Gather the target-class (shifted) logit via one-hot compare
        # (no dynamic gather on TPU).
        col = lax.broadcasted_iota(jnp.int32, x.shape, 1)             # (row_tile, C)
        picked = jnp.sum(jnp.where(col == t, shifted, 0.0),
                         axis=-1, keepdims=True)                      # (row_tile, 1)

        ce_rows = jnp.log(sum_e) - picked                             # (row_tile, 1)

        if needs_mask:
            # Mask rows past N: handles a trailing partial block and the
            # clamped duplicate block the second core sees when the block
            # count is odd.
            blk = c * n_steps + i
            row_ids = blk * row_tile + lax.broadcasted_iota(
                jnp.int32, (row_tile, 1), 0)
            ce_rows = jnp.where(row_ids < n_total, ce_rows, 0.0)

        # Widened accumulator: elementwise add only; no per-step scalar reduce.
        acc_ref[...] += ce_rows

        @pl.when(i == n_steps - 1)
        def _():
            partial = jnp.sum(acc_ref[...])           # one XLU reduce per core
            out_ref[...] = jnp.full(out_ref.shape, 0.0, jnp.float32) + partial

    return kernel


def _pick_row_tile(n, c):
    # Keep the in-kernel f32 working set (~4 copies of the (row_tile, C) tile)
    # around 4 MiB so double-buffered inputs + temporaries stay well inside
    # even v7x's 64 MiB physical VMEM, while blocks remain large enough to
    # amortize the ~0.35 us per-grid-step pipeline overhead.
    budget_f32_bytes = 4 * 1024 * 1024
    rt = budget_f32_bytes // max(1, c * 4)
    rt = max(8, min(1024, rt))
    n_pad8 = ((n + 7) // 8) * 8
    rt = min(rt, n_pad8)
    return max(8, (rt // 8) * 8)


def focal_loss(inputs, targets, alpha=0.25, gamma=2, *, row_tile=None):
    """inputs: float[N, C] logits (f32 or bf16), targets: int[N]. Returns f32 scalar."""
    N, C = inputs.shape
    if row_tile is None:
        row_tile = _pick_row_tile(N, C)
    t2d = targets.astype(jnp.int32).reshape(N, 1)

    n_blocks = pl.cdiv(N, row_tile)
    n_cores = 2                                   # v7x has 2 TCs; harmless elsewhere
    steps = pl.cdiv(n_blocks, n_cores)
    last_blk = n_blocks - 1

    # Mask is only compiled in when there is a trailing partial row block or a
    # clamped duplicate block (odd block count split across two cores).
    needs_mask = (N % row_tile != 0) or (n_blocks % n_cores != 0)

    def in_map(c, i):
        # Clamp so the block start always stays inside the array; duplicate
        # (clamped) blocks are fully masked out inside the kernel.
        return (jnp.minimum(c * steps + i, last_blk), 0)

    in_itemsize = jnp.dtype(inputs.dtype).itemsize
    vmem_limit = (2 * (row_tile * C * in_itemsize + row_tile * 4)   # dbl-buffered inputs
                  + 4 * row_tile * C * 4                            # f32 temporaries
                  + row_tile * 4                                    # accumulator scratch
                  + 2 * (8 * 128 * 4)                               # output buffers
                  + 2 * 1024 * 1024)                                # slack
    vmem_limit = int(min(max(vmem_limit, 16 * 1024 * 1024), 64 * 1024 * 1024))

    partials = pl.pallas_call(
        _focal_ce_kernel(row_tile, N, needs_mask),
        out_shape=jax.ShapeDtypeStruct((n_cores, 8, 128), jnp.float32),
        grid_spec=pltpu.PrefetchScalarGridSpec(
            num_scalar_prefetch=0,
            grid=(n_cores, steps),
            in_specs=[
                pl.BlockSpec((row_tile, C), in_map),
                pl.BlockSpec((row_tile, 1), in_map),
            ],
            out_specs=pl.BlockSpec((1, 8, 128), lambda c, i: (c, 0, 0)),
            scratch_shapes=[pltpu.VMEM((row_tile, 1), jnp.float32)],
        ),
        compiler_params=pltpu.CompilerParams(
            dimension_semantics=("parallel", "arbitrary"),
            vmem_limit_bytes=vmem_limit),
    )(inputs, t2d)

    # Scalar epilogue: must run after the full cross-core reduction; perf noise.
    ce_mean = jnp.sum(partials[:, 0, 0]) / jnp.float32(N)
    pt = jnp.exp(-ce_mean)
    g = float(gamma)
    if g.is_integer():
        weight = lax.integer_pow(1.0 - pt, int(g))   # exact for integer gamma
    else:
        weight = (1.0 - pt) ** g
    return jnp.float32(alpha) * weight * ce_mean


def _focal_loss_ref(inputs, targets, alpha=0.25, gamma=2):
    # Pure-JAX reference mirroring F.cross_entropy(reduction='mean') + focal term.
    logp = jax.nn.log_softmax(inputs.astype(jnp.float32), axis=-1)
    ce_rows = -jnp.take_along_axis(
        logp, targets[:, None].astype(jnp.int32), axis=-1)[:, 0]
    ce = jnp.mean(ce_rows)
    pt = jnp.exp(-ce)
    return alpha * (1.0 - pt) ** gamma * ce


if __name__ == "__main__":
    key = jax.random.PRNGKey(0)
    k1, k2, k3, k4 = jax.random.split(key, 4)

    # Small shapes consistent with a classification loss: batch x num_classes.
    N, C = 16, 32
    inputs = jax.random.normal(k1, (N, C), dtype=jnp.float32)
    targets = jax.random.randint(k2, (N,), 0, C, dtype=jnp.int32)

    out = jax.block_until_ready(focal_loss(inputs, targets, alpha=0.25, gamma=2))
    ref = _focal_loss_ref(inputs, targets, alpha=0.25, gamma=2)
    assert jnp.allclose(out, ref, rtol=2e-5, atol=1e-5), (out, ref)

    # Ragged batch (N not a multiple of the row tile) exercises the in-kernel mask.
    N2 = 19
    inputs2 = jax.random.normal(k3, (N2, C), dtype=jnp.float32)
    targets2 = jax.random.randint(k4, (N2,), 0, C, dtype=jnp.int32)
    out2 = jax.block_until_ready(focal_loss(inputs2, targets2))
    ref2 = _focal_loss_ref(inputs2, targets2)
    assert jnp.allclose(out2, ref2, rtol=2e-5, atol=1e-5), (out2, ref2)

    # bf16 logits stream at half the HBM bytes and are upcast inside the kernel.
    inputs_bf16 = inputs.astype(jnp.bfloat16)
    out3 = jax.block_until_ready(focal_loss(inputs_bf16, targets))
    ref3 = _focal_loss_ref(inputs_bf16.astype(jnp.float32), targets)
    assert jnp.allclose(out3, ref3, rtol=2e-5, atol=1e-5), (out3, ref3)

    # Non-integer gamma path.
    out4 = jax.block_until_ready(focal_loss(inputs, targets, alpha=0.5, gamma=1.5))
    ref4 = _focal_loss_ref(inputs, targets, alpha=0.5, gamma=1.5)
    assert jnp.allclose(out4, ref4, rtol=2e-5, atol=1e-5), (out4, ref4)

    print("KERNEL_OK")
</pallas_src>

<mosaic_0001>
module attributes {stable_mosaic.version = 11 : i64} {
  func.func @kernel(%arg0: i32, %arg1: i32, %arg2: memref<16x32xf32, #tpu.memory_space<vmem>>, %arg3: memref<16x1xi32, #tpu.memory_space<vmem>>, %arg4: memref<1x8x128xf32, #tpu.memory_space<vmem>>, %arg5: memref<16x1xf32, #tpu.memory_space<vmem>>) attributes {dimension_semantics = [#tpu.dimension_semantics<parallel>, #tpu.dimension_semantics<arbitrary>], iteration_bounds = array<i64: 2, 1>, scalar_prefetch = 0 : i64, scratch_operands = 1 : i64, tpu.core_type = #tpu.core_type<tc>, window_params = [{transform_indices = @transform_0, window_bounds = array<i64: 16, 32>}, {transform_indices = @transform_1, window_bounds = array<i64: 16, 1>}, {transform_indices = @transform_2, window_bounds = array<i64: 1, 8, 128>}]} {
    %c0_i32 = arith.constant 0 : i32
    %0 = arith.cmpi eq, %arg1, %c0_i32 : i32
    %1 = arith.extui %0 : i1 to i32
    %c0_i32_0 = arith.constant 0 : i32
    %2 = arith.cmpi ne, %1, %c0_i32_0 : i32
    scf.if %2 {
      %cst_15 = arith.constant 0.000000e+00 : f32
      %37 = vector.broadcast %cst_15 : f32 to vector<16x1xf32>
      %c0_16 = arith.constant 0 : index
      %c0_17 = arith.constant 0 : index
      %38 = vector.load %arg5[%c0_16, %c0_17] : memref<16x1xf32, #tpu.memory_space<vmem>>, vector<16x1xf32>
      tpu.vector_store %arg5[%c0_16, %c0_17], %37 {strides = array<i32>} : memref<16x1xf32, #tpu.memory_space<vmem>>, vector<16x1xf32>,
    } else {
    }
    %c0 = arith.constant 0 : index
    %c0_1 = arith.constant 0 : index
    %3 = vector.load %arg2[%c0, %c0_1] : memref<16x32xf32, #tpu.memory_space<vmem>>, vector<16x32xf32>
    %c0_2 = arith.constant 0 : index
    %c0_3 = arith.constant 0 : index
    %4 = vector.load %arg3[%c0_2, %c0_3] : memref<16x1xi32, #tpu.memory_space<vmem>>, vector<16x1xi32>
    %cst = arith.constant dense<0xFF800000> : vector<16xf32>
    %5 = vector.multi_reduction <maximumf>, %3, %cst [1] : vector<16x32xf32> to vector<16xf32>
    %6 = vector.shape_cast %5 : vector<16xf32> to vector<16x1xf32>
    %7 = vector.broadcast %6 : vector<16x1xf32> to vector<16x32xf32>
    %8 = arith.subf %3, %7 : vector<16x32xf32>
    %9 = math.exp %8 : vector<16x32xf32>
    %cst_4 = arith.constant dense<0.000000e+00> : vector<16xf32>
    %10 = vector.multi_reduction <add>, %9, %cst_4 [1] : vector<16x32xf32> to vector<16xf32>
    %11 = vector.shape_cast %10 : vector<16xf32> to vector<16x1xf32>
    %12 = tpu.iota {dimensions = array<i32: 1>} : vector<16x32xi32>
    %13 = vector.broadcast %4 : vector<16x1xi32> to vector<16x32xi32>
    %14 = arith.cmpi eq, %12, %13 : vector<16x32xi32>
    %cst_5 = arith.constant 0.000000e+00 : f32
    %15 = vector.broadcast %cst_5 : f32 to vector<16x32xf32>
    %16 = arith.select %14, %8, %15 : vector<16x32xi1>, vector<16x32xf32>
    %cst_6 = arith.constant dense<0.000000e+00> : vector<16xf32>
    %17 = vector.multi_reduction <add>, %16, %cst_6 [1] : vector<16x32xf32> to vector<16xf32>
    %18 = vector.shape_cast %17 : vector<16xf32> to vector<16x1xf32>
    %19 = math.log %11 : vector<16x1xf32>
    %20 = arith.subf %19, %18 : vector<16x1xf32>
    %c1_i32 = arith.constant 1 : i32
    %21 = arith.muli %arg0, %c1_i32 : i32
    %22 = arith.addi %21, %arg1 : i32
    %c16_i32 = arith.constant 16 : i32
    %23 = arith.muli %22, %c16_i32 : i32
    %24 = tpu.iota {dimensions = array<i32: 0>} : vector<16x1xi32>
    %25 = vector.broadcast %23 : i32 to vector<16x1xi32>
    %26 = arith.addi %25, %24 : vector<16x1xi32>
    %c16_i32_7 = arith.constant 16 : i32
    %27 = vector.broadcast %c16_i32_7 : i32 to vector<16x1xi32>
    %28 = arith.cmpi slt, %26, %27 : vector<16x1xi32>
    %cst_8 = arith.constant 0.000000e+00 : f32
    %29 = vector.broadcast %cst_8 : f32 to vector<16x1xf32>
    %30 = arith.select %28, %20, %29 : vector<16x1xi1>, vector<16x1xf32>
    %c0_9 = arith.constant 0 : index
    %c0_10 = arith.constant 0 : index
    %31 = vector.load %arg5[%c0_9, %c0_10] : memref<16x1xf32, #tpu.memory_space<vmem>>, vector<16x1xf32>
    %32 = arith.addf %31, %30 : vector<16x1xf32>
    %c0_11 = arith.constant 0 : index
    %c0_12 = arith.constant 0 : index
    %33 = vector.load %arg5[%c0_11, %c0_12] : memref<16x1xf32, #tpu.memory_space<vmem>>, vector<16x1xf32>
    tpu.vector_store %arg5[%c0_11, %c0_12], %32 {strides = array<i32>} : memref<16x1xf32, #tpu.memory_space<vmem>>, vector<16x1xf32>,
    %c0_i32_13 = arith.constant 0 : i32
    %34 = arith.cmpi eq, %arg1, %c0_i32_13 : i32
    %35 = arith.extui %34 : i1 to i32
    %c0_i32_14 = arith.constant 0 : i32
    %36 = arith.cmpi ne, %35, %c0_i32_14 : i32
    scf.if %36 {
      %c0_15 = arith.constant 0 : index
      %c0_16 = arith.constant 0 : index
      %37 = vector.load %arg5[%c0_15, %c0_16] : memref<16x1xf32, #tpu.memory_space<vmem>>, vector<16x1xf32>
      %38 = vector.shape_cast %37 : vector<16x1xf32> to vector<1x16x1xf32>
      %cst_17 = arith.constant dense<0.000000e+00> : vector<1xf32>
      %39 = vector.multi_reduction <add>, %38, %cst_17 [1, 2] : vector<1x16x1xf32> to vector<1xf32>
      %40 = vector.shape_cast %39 : vector<1xf32> to vector<1x1x1xf32>
      %41 = vector.extract %40[0, 0, 0] : f32 from vector<1x1x1xf32>
      %cst_18 = arith.constant 0.000000e+00 : f32
      %42 = vector.broadcast %cst_18 : f32 to vector<1x8x128xf32>
      %43 = vector.broadcast %41 : f32 to vector<1x8x128xf32>
      %44 = arith.addf %42, %43 : vector<1x8x128xf32>
      %c0_19 = arith.constant 0 : index
      %c0_20 = arith.constant 0 : index
      %c0_21 = arith.constant 0 : index
      %45 = vector.load %arg4[%c0_19, %c0_20, %c0_21] : memref<1x8x128xf32, #tpu.memory_space<vmem>>, vector<1x8x128xf32>
      tpu.vector_store %arg4[%c0_19, %c0_20, %c0_21], %44 {strides = array<i32>} : memref<1x8x128xf32, #tpu.memory_space<vmem>>, vector<1x8x128xf32>,
    } else {
    }
    return
  }
  func.func @transform_0(%arg0: i32, %arg1: i32) -> (i32, i32) {
    %c1_i32 = arith.constant 1 : i32
    %0 = arith.muli %arg0, %c1_i32 : i32
    %1 = arith.addi %0, %arg1 : i32
    %c0_i32 = arith.constant 0 : i32
    %2 = arith.minsi %1, %c0_i32 : i32
    %c0_i32_0 = arith.constant 0 : i32
    %c0_i32_1 = arith.constant 0 : i32
    return %2, %c0_i32_0 : i32, i32
  }
  func.func @transform_1(%arg0: i32, %arg1: i32) -> (i32, i32) {
    %c1_i32 = arith.constant 1 : i32
    %0 = arith.muli %arg0, %c1_i32 : i32
    %1 = arith.addi %0, %arg1 : i32
    %c0_i32 = arith.constant 0 : i32
    %2 = arith.minsi %1, %c0_i32 : i32
    %c0_i32_0 = arith.constant 0 : i32
    %c0_i32_1 = arith.constant 0 : i32
    return %2, %c0_i32_0 : i32, i32
  }
  func.func @transform_2(%arg0: i32, %arg1: i32) -> (i32, i32, i32) {
    %c0_i32 = arith.constant 0 : i32
    %c0_i32_0 = arith.constant 0 : i32
    %c0_i32_1 = arith.constant 0 : i32
    return %arg0, %c0_i32, %c0_i32_0 : i32, i32, i32
  }
}

</mosaic_0001>

<bundles_post_ra>
// kernel: tpu_custom_call.1
= control target key start
LH: loop header
LB: loop body
LE: loop exit
PB: predicated region body
PF: predicated region fallthrough
CT: control target
= control target key end

     0   :  { %7 = vsyncpa [#allocation4], 0  ;;  %s707_s0 = inlined_call_operand.vmem [shape: f32[16,32], index: 0, kind: input, shape index: {}]   ;;  %s708_s1 = inlined_call_operand.vmem [shape: s32[16,1], index: 1, kind: input, shape index: {}]   ;;  %s709_s2 = inlined_call_operand.hbm [shape: f32[2,8,128], index: 2, kind: output, shape index: {}]  }
   0x1   :  { %9 = vsyncpa [#allocation4 + $0x1], 0  ;;  %s586_s9 = smov 0   ;;  %s588_s10 = smov 0  }
   0x2   :  { %s590_s11 = smov 0   ;;  %s592_s12 = smov 0  }
   0x3   :  { %s594_s13 = smov 0   ;;  %s596_s14 = smov 0  }
   0x4 LB: > { %s406_s15 = sadd.s32 4294967295, %s566_s14   ;;  %s407_s16 = sadd.s32 4294967294, %s566_s14   ;;  %s566_s14 = sphi %s596_s14, %s15_s14   ;;  %s562_s13 = sphi %s594_s13, %s716_s13   ;;  %s558_s12 = sphi %s592_s12, %s715_s12   ;;  %s554_s11 = sphi %s590_s11, %s714_s11   ;;  %s550_s10 = sphi %s588_s10, %s713_s10   ;;  %s546_s9 = sphi %s586_s9, %s712_s9  }
   0x5   : > { %s27_s17 = sadd.s32 1, %s562_s13  ;;  %s98_s18 = sadd.s32 1, %s554_s11 }
   0x6   : > { %p29_p0 = scmp.ge.s32.totalorder %s27_s17, 2  ;;  %p108_p1 = scmp.ne.s32.totalorder %s554_s11, %s550_s10 }
   0x7   : > { %p109_p2 = scmp.eq.s32.totalorder %s406_s15, 1  ;;  %p114_p3 = scmp.ne.s32.totalorder %s550_s10, %s546_s9 }
   0x8   : > { %s718_s17 = smov (%p29_p0, %s27_s17), 0  ;;  %p115_p5 = scmp.eq.s32.totalorder %s407_s16, 1 }
   0x9   : > { %p626_p4 = por %p109_p2, %p108_p1  ;;  %s95_s20 = ssub.s32 %s562_s13, %s718_s17 }
   0xa   : > { %p410_p6 = scmp.ge.s32.totalorder %s566_s14, 1  ;;  %p96_p7 = scmp.eq.s32.totalorder %s95_s20, 0 }
   0xb   : > { %p633_p8 = por %p115_p5, %p114_p3  ;;  %p163_p9 = scmp.lt.s32.totalorder %s566_s14, 3 }
   0xc   : > { %s639_s22 = scalar_select %p96_p7, %s554_s11, %s98_s18  }
   0xd   : > { %p164_p10 = pnand %p410_p6, %p163_p9 }
   0xe   : > { %p197_p11 = scmp.lt.s32.totalorder (!%p164_p10), %s558_s12, 0  ;;  %s416_s4 = sshll.u32 (!%p164_p10), %s558_s12, 4 }
   0xf   : > { %167 = sbr.rel (%p164_p10) target bundleno = 575 (0x23f), region = 28  ;;  %s193_s5 = sand.u32 (!%p164_p10), 1, %s550_s10  }
  0x10   : > { %s411_s6 = sshll.u32 (!%p164_p10), %s193_s5, 3  ;;  %s418_s15 = sshll.u32 (!%p164_p10), %s558_s12, 7 }
  0x11   : > { %s195_s7 = scalar_lea.vmem (!%p164_p10), [#allocation3], %s411_s6  ;;  %s570_s26 = smov (!%p164_p10), [#allocation3]  }
  0x12   : > { %s327_s8 = sshll.u32 (!%p164_p10), %s195_s7, 4  ;;  %s664_s8 = int_to_ptr.vmem [resolvable:$true] %s327_s8 }
  0x14   : > { %v568_v0 = vmov 0   ;;  %s198_s23 = scalar_select %p197_p11, %s558_s12, 0  ;;  %vm231_vm0 = vcmask 261120   ;;  %v250_v13 = vlaneseq  ;;  %vm224_vm3 = vcmask 7168  }
  0x15   : > { %480 = vset.pattern.permute.xlu1 %v568_v0  ;;  %481 = vset.pattern.permute.xlu0 %v568_v0  ;;  %v569_v25 = vmov 0.0   ;;  %v279_v29 = vstv %s416_s4  ;;  %s494_s12 = sshll.u32 %s570_s26, 4  ;;  %s495_s12 = int_to_ptr.vmem [resolvable:$false] %s494_s12 }
  0x16   : > { %s412_s24 = sshll.u32 %s198_s23, 1  ;;  %v251_v15 = vand.u32 127, %v250_v13  ;;  %225 = vst.msk [vmem:[#allocation2] sm:$0xff] %vm224_vm3, %v569_v25  ;;  %226 = vst.msk [vmem:[#allocation2 + $0x8] sm:$0xff] %vm224_vm3, %v569_v25  ;;  %v277_v28 = vshrl.u32 %v250_v13, 7  ;;  %s325_s23 = scalar_lea.hbm %s709_s2, %s418_s15 }
  0x17   : > { %p200_p12 = scmp.lt.s32.totalorder %s412_s24, 1  ;;  %s496_s27 = scalar_lea.vmem %s495_s12, 256 }
  0x18   : > { %v280_v30 = vadd.s32 %v279_v29, %v277_v28  ;;  %v278_v31 = vadd.s32 8, %v277_v28  ;;  %p497_p2 = scmp.lt.s32.totalorder %s664_s8, %s495_s12 }
  0x19   : > { %s720_s24 = smov (!%p200_p12, %s412_s24), 1 }
  0x1a   : > { %s413_s25 = sshll.u32 %s720_s24, 3  ;;  %vm282_vm4 = vcmp.lt.s32.totalorder %v280_v30, 16  ;;  %v281_v35 = vadd.s32 %v279_v29, %v278_v31  ;;  %s314_s24 = scalar_lea.sflag [#allocation4], %s193_s5 }
  0x1b   : > { %s203_s28 = scalar_lea.vmem %s707_s0, %s413_s25  ;;  %s215_s3 = scalar_lea.vmem %s708_s1, %s413_s25 }
  0x1c   : > { %v227_v1 = vld [vmem:[%s203_s28] sm:$0xff]  ;;  %v228_v2 = vld [vmem:[%s203_s28 + $0x8] sm:$0xff]  ;;  %vm283_vm5 = vcmp.lt.s32.totalorder %v281_v35, 16  ;;  %s490_s25 = scalar_lea.vmem %s664_s8, 128 }
  0x1d   : > { %v229_v3 = vld [vmem:[%s215_s3] sm:$0xff]  ;;  %v232_v4 = vsel %vm231_vm0, %v227_v1, -inf  ;;  %v230_v5 = vld [vmem:[%s215_s3 + $0x8] sm:$0xff]  ;;  %v235_v6 = vsel %vm231_vm0, %v228_v2, -inf  ;;  %p491_p13 = scmp.ne.s32.totalorder %s664_s8, %s490_s25  ;;  %p498_p3 = scmp.lt.s32.totalorder %s496_s27, %s490_s25 }
  0x1e   : > { %253 = vperm.xlu1 %480, %v229_v3   ;;  %233 = vmax.xlane.f32.xlu0 %v232_v4  ;;  %v286_v36 = vld [vmem:[#allocation2] sm:$0xff]  ;;  %v287_v43 = vld [vmem:[#allocation2 + $0x8] sm:$0xff] }
  0x1f   : > { %p492_p0 = pnand %p491_p13, %p626_p4  ;;  %p499_p5 = por %p498_p3, %p497_p2 }
  0x21   : > { %p493_p1 = pneg %p492_p0 }
  0x22   : > { %256 = vperm.xlu1 %480, %v230_v5   ;;  %236 = vmax.xlane.f32.xlu0 %v235_v6 }
  0x23   : > { %p500_p6 = pnand %p499_p5, %p493_p1 }
  0x99   : > { %v254_v14 = vpop.permute.xlu1 %253 }
  0x9a   : > { %vm258_vm1 = vcmp.eq.s32.totalorder %v251_v15, %v254_v14 }
  0x9d   : > { %v257_v17 = vpop.permute.xlu1 %256 }
  0x9e   : > { %vm259_vm2 = vcmp.eq.s32.totalorder %v251_v15, %v257_v17 }
  0xa7   : > { %v234_v7 = vpop.xlane.xlu0 %233 }
  0xa8   : > { %v238_v8 = vsub.f32 %v227_v1, %v234_v7 }
  0xaa   : > { %v240_v9 = vmul.f32 1.442695, %v238_v8  ;;  %v260_v19 = vsel %vm258_vm1, %v238_v8, 0.0 }
  0xab   : > { %v237_v10 = vpop.xlane.xlu0 %236  ;;  %v262_v21 = vsel %vm231_vm0, %v260_v19, 0.0 }
  0xac   : > { %482 = vpow2.f32 %v240_v9  ;;  %v239_v11 = vsub.f32 %v228_v2, %v237_v10 }
  0xae   : > { %v242_v12 = vmul.f32 1.442695, %v239_v11  ;;  %v261_v23 = vsel %vm259_vm2, %v239_v11, 0.0 }
  0xaf   : > { %v265_v24 = vsel %vm231_vm0, %v261_v23, 0.0 }
  0xb0   : > { %484 = vpow2.f32 %v242_v12 }
  0xb9   : > { %v483_v16 = vpop.eup %482 }
  0xba   : > { %v244_v18 = vsel %vm231_vm0, %v483_v16, 0.0 }
  0xbb   : > { %245 = vadd.xlane.f32.xlu0 %v244_v18 }
  0xbd   : > { %v485_v20 = vpop.eup %484 }
  0xbe   : > { %v247_v22 = vsel %vm231_vm0, %v485_v20, 0.0 }
  0xbf   : > { %263 = vadd.xlane.f32.xlu0 %v262_v21  ;;  %248 = vadd.xlane.f32.xlu1 %v247_v22 }
  0xc3   : > { %266 = vadd.xlane.f32.xlu0 %v265_v24 }
 0x144   : > { %v246_v26 = vpop.xlane.xlu0 %245 }
 0x145   : > { %486 = vlog2.f32 %v246_v26 }
 0x148   : > { %v249_v27 = vpop.xlane.xlu1 %248  ;;  %v264_v33 = vpop.xlane.xlu0 %263 }
 0x149   : > { %488 = vlog2.f32 %v249_v27 }
 0x14c   : > { %v267_v42 = vpop.xlane.xlu0 %266 }
 0x152   : > { %v487_v32 = vpop.eup %486 }
 0x153   : > { %v269_v34 = vmul.f32 0.6931472, %v487_v32 }
 0x155   : > { %v272_v37 = vsub.f32 %v269_v34, %v264_v33 }
 0x156   : > { %v489_v38 = vpop.eup %488 }
 0x157   : > { %v284_v39 = vsel %vm282_vm4, %v272_v37, 0.0  ;;  %v271_v40 = vmul.f32 0.6931472, %v489_v38 }
 0x158   : > { %v288_v41 = vadd.f32 %v286_v36, %v284_v39 }
 0x159   : > { %v273_v44 = vsub.f32 %v271_v40, %v267_v42 }
 0x15a   : > { %291 = vst.msk [vmem:[#allocation2] sm:$0xff] %vm224_vm3, %v288_v41 }
 0x15b   : > { %v285_v45 = vsel %vm283_vm5, %v273_v44, 0.0 }
 0x15c   : > { %v289_v46 = vadd.f32 %v287_v43, %v285_v45 }
 0x15e   : > { %292 = vst.msk [vmem:[#allocation2 + $0x8] sm:$0xff] %vm224_vm3, %v289_v46 }
 0x161   : > { %v296_v47 = vld [vmem:[#allocation2] sm:$0xff] }
 0x162   : > { %v298_v49 = vsel %vm224_vm3, %v296_v47, 0.0 }
 0x165   : > { %v297_v48 = vld [vmem:[#allocation2 + $0x8] sm:$0xff] }
 0x166   : > { %v299_v50 = vsel %vm224_vm3, %v297_v48, 0.0 }
 0x167   : > { %v300_v51 = vadd.f32 %v299_v50, %v298_v49 }
 0x169   : > { %301 = vadd.xlane.f32.xlu0 %v300_v51 }
 0x1f2   : > { %v302_v52 = vpop.xlane.xlu0 %301 }
 0x1f3   : > { %v303_v53 = vrot.slane %v302_v52, 4 }
 0x1f5   : > { %v304_v54 = vadd.f32 %v303_v53, %v302_v52 }
 0x1f7   : > { %v305_v55 = vrot.slane %v304_v54, 2 }
 0x1f9   : > { %v306_v56 = vadd.f32 %v305_v55, %v304_v54 }
 0x1fb   : > { %v307_v57 = vrot.slane %v306_v56, 1 }
 0x1fd   : > { %v308_v58 = vadd.f32 %v307_v57, %v306_v56 }
 0x1ff   : > { %421 = vpush %v308_v58 }
 0x230   : > { %s422_s16 = spop %421 }
 0x231   : > { %v310_v59 = vstv %s422_s16 }
 0x232   : > { %312 = vst [vmem:[%s195_s7] sm:$0xff] %v310_v59 }
 0x233   : > { %503 = shalt.err (!%p500_p6)
}
 0x234   : > { %s504_s28 = scalar_lea.hbm %s325_s23, 128  ;;  %s508_s3 = scalar_lea.hbm %s709_s2, 256 }
 0x235   : > { %p505_p7 = scmp.ne.s32.totalorder %s325_s23, %s504_s28  ;;  %p509_p11 = scmp.lt.s32.totalorder %s325_s23, %s709_s2 }
 0x236   : > { %p510_p12 = scmp.lt.s32.totalorder %s508_s3, %s504_s28 }
 0x237   : > { %p506_p9 = pnand %p505_p7, %p626_p4 }
 0x238   : > { %p511_p13 = por %p510_p12, %p509_p11 }
 0x239   : > { %p507_p10 = pneg %p506_p9 }
 0x23b   : > { %p512_p0 = pnand %p511_p13, %p507_p10 }
 0x23d   : > { %515 = shalt.err (!%p512_p0)
}
 0x23e   : > { %423 = dma.vmem_to_hbm [thread:$0]  (%p626_p4), %s664_s8, 128, %s325_s23, %s314_s24  }
 0x23f PF: > { %p429_p1 = scmp.ge.s32.totalorder %s566_s14, 2  ;;  %s339_s6 = sand.u32 1, %s546_s9  }
 0x240   : > { %s340_s7 = scalar_lea.sflag [#allocation4], %s339_s6 }
 0x241   : > { %p426_p2 = pnand %p429_p1, %p633_p8 }
 0x243   : > { %p427_p3 = pneg %p426_p2 }
 0x245   : > { %541 = dma.done.wait (%p427_p3), %s340_s7, 128  }
 0x246   : > { %543 = vsyncadd (%p427_p3), %s340_s7, 4294967168  ;;  %s15_s14 = sadd.s32 1, %s566_s14   ;;  %s712_s9 = smov %s550_s10 }
 0x247   : > { %p12_p5 = scmp.ge.s32.totalorder %s15_s14, 4   ;;  %s713_s10 = smov %s554_s11 }
 0x248   : > { %s714_s11 = smov %s639_s22  ;;  %s715_s12 = smov %s562_s13 }
 0x249   : > { %s716_s13 = smov %s718_s17  ;;  %14 = sbr.rel (!%p12_p5) target bundleno = 4 (0x4), region = 74 }
 0x24e   :  { %345 = vsyncpa [#allocation4], 1 }
 0x24f   :  { %347 = vsyncpa [#allocation4 + $0x1], 1 }

</bundles_post_ra>
